<compile_context>
chip_gen: v7x
topology: tpu7x:2x2x1
jax: 0.10.0
libtpu: 0.0.40
codegen_flags: <defaults>
</compile_context>

<pallas_src>
import jax
import jax.numpy as jnp
from jax.experimental import pallas as pl
from jax.experimental.pallas import tpu as pltpu

GENRE_WEIGHT = 3.0


def _conditioned_embeds_kernel(
    tids_ref,       # SMEM  [B, S]    int32  (scalar prefetch: token ids drive the gather)
    gids_ref,       # VMEM  [B, Gmax] int32
    gmask_ref,      # VMEM  [B, Gmax] int32
    gtab_ref,       # VMEM  [G, H]    float32 (genre embedding table)
    ttab_ref,       # VMEM  [V, H]    float32 (token embedding table)
    genre_out_ref,  # VMEM  [B, H]    float32 (pooled genre embedding per batch row)
    tok_out_ref,    # VMEM  [B, S, H] float32 (token embeddings)
):
    B, Gmax = gids_ref.shape
    G, H = gtab_ref.shape
    S = tok_out_ref.shape[1]

    # ---- genre masked mean-pool, batched over B: (B, G) weights @ (G, H) table ----
    gids = gids_ref[...]                                   # (B, Gmax) int32
    gmask = gmask_ref[...].astype(jnp.float32)             # (B, Gmax)
    iota_g = jax.lax.broadcasted_iota(jnp.int32, (B, G), 1)
    weights = jnp.zeros((B, G), jnp.float32)
    for j in range(Gmax):                                  # Gmax is small and static
        weights = weights + jnp.where(
            iota_g == gids[:, j:j + 1], gmask[:, j:j + 1], 0.0)
    # NOTE: all-zero genre mask gives denom == 0 -> NaN row, same as the PyTorch reference.
    denom = jnp.sum(gmask, axis=1, keepdims=True)          # (B, 1)
    # Fold genre_weight / denom into the small (B, G) weights instead of dividing (B, H).
    weights = weights * (GENRE_WEIGHT / denom)
    genre_out_ref[...] = jnp.dot(
        weights, gtab_ref[...], preferred_element_type=jnp.float32)   # (B, H)

    # ---- token embedding lookup as a true gather (no one-hot x full-table matmul) ----
    # TODO(synk): for realistic vocab sizes keep token_table in HBM
    #             (BlockSpec(memory_space=pl.ANY)) and DMA only the S needed rows with
    #             make_async_copy / an Element(1) row-gather, instead of a VMEM-resident table.
    for b in range(B):                                     # B*S static, small (toy sizes)
        for s in range(S):
            tid = tids_ref[b, s]                           # SMEM scalar
            tok_out_ref[b, pl.ds(s, 1), :] = ttab_ref[pl.ds(tid, 1), :]


def conditioned_inputs(genre_ids, genre_mask, token_ids, genre_table, token_table):
    """Returns conditioned_inputs of shape [B, S+1, H] (float32)."""
    B, Gmax = genre_ids.shape
    _, S = token_ids.shape
    G, H = genre_table.shape
    V, _ = token_table.shape

    grid_spec = pltpu.PrefetchScalarGridSpec(
        num_scalar_prefetch=1,                 # token ids -> SMEM, drive the gather
        grid=(1,),                             # whole (small) batch per step; tile B in
                                               # multiples of 8 rows for large batches
        in_specs=[
            pl.BlockSpec((B, Gmax), lambda i, *_: (0, 0)),   # genre ids
            pl.BlockSpec((B, Gmax), lambda i, *_: (0, 0)),   # genre mask
            pl.BlockSpec((G, H), lambda i, *_: (0, 0)),      # genre table (full, tiny)
            pl.BlockSpec((V, H), lambda i, *_: (0, 0)),      # token table (full, toy-sized)
        ],
        out_specs=[
            pl.BlockSpec((B, H), lambda i, *_: (0, 0)),      # pooled genre embeds
            pl.BlockSpec((B, S, H), lambda i, *_: (0, 0, 0)),  # token embeds
        ],
    )

    genre_embed, tok_embeds = pl.pallas_call(
        _conditioned_embeds_kernel,
        out_shape=(
            jax.ShapeDtypeStruct((B, H), jnp.float32),
            jax.ShapeDtypeStruct((B, S, H), jnp.float32),
        ),
        grid_spec=grid_spec,
        compiler_params=pltpu.CompilerParams(
            dimension_semantics=("parallel",),   # disjoint output blocks per grid step
        ),
    )(token_ids, genre_ids, genre_mask, genre_table, token_table)

    # Both kernel outputs are lane/sublane-dense; the sequence concat is trivial glue.
    return jnp.concatenate([genre_embed[:, None, :], tok_embeds], axis=1)


def reference(genre_ids, genre_mask, token_ids, genre_table, token_table):
    ge = genre_table[genre_ids]                                  # (B, Gmax, H)
    masked = ge * genre_mask[..., None].astype(jnp.float32)
    pooled = masked.sum(axis=1) / genre_mask.astype(jnp.float32).sum(
        axis=1, keepdims=True) * GENRE_WEIGHT                    # (B, H)
    tok = token_table[token_ids]                                 # (B, S, H)
    return jnp.concatenate([pooled[:, None, :], tok], axis=1)


if __name__ == "__main__":
    # ---- model "parameters", deterministically initialized ----
    genre_list = ["rock", "jazz", "pop", "metal", "folk", "blues", "rap", "classical"]
    genre_to_id = {g: i for i, g in enumerate(genre_list)}

    B, S, H = 2, 8, 128          # batch, sequence length, hidden size
    G = len(genre_list)          # genre vocab (8)
    V = 256                      # token vocab (toy)

    key = jax.random.PRNGKey(0)
    k1, k2, k3 = jax.random.split(key, 3)
    genre_table = jax.random.normal(k1, (G, H), dtype=jnp.float32)
    token_table = jax.random.normal(k2, (V, H), dtype=jnp.float32)

    # ---- example inputs (Python glue mirrors the original module's list handling) ----
    genre = [["Rock", "Jazz"], ["Pop", "Metal", "Folk"]]
    genre_ids_list = [
        [genre_to_id[g.lower()] for g in sorted(gs) if g.lower() in genre_to_id]
        for gs in genre
    ]
    max_len = max(len(ids) for ids in genre_ids_list)
    padded = [ids + [0] * (max_len - len(ids)) for ids in genre_ids_list]
    mask = [[1] * len(ids) + [0] * (max_len - len(ids)) for ids in genre_ids_list]

    genre_ids = jnp.asarray(padded, dtype=jnp.int32)             # (B, Gmax)
    genre_mask = jnp.asarray(mask, dtype=jnp.int32)              # (B, Gmax)

    input_ids = jax.random.randint(k3, (B, S), 0, V, dtype=jnp.int32)
    attention_mask = jnp.ones((B, S), dtype=jnp.int32)
    labels = jax.random.randint(k3, (B, S), 0, V, dtype=jnp.int32)

    # ---- kernel: build conditioned input embeddings ----
    out = conditioned_inputs(genre_ids, genre_mask, input_ids, genre_table, token_table)
    out = jax.block_until_ready(out)

    # ---- trivial glue (same as torch.cat calls on mask / labels) ----
    extended_mask = jnp.concatenate(
        [jnp.ones((B, 1), dtype=attention_mask.dtype), attention_mask], axis=1)
    extended_labels = jnp.concatenate(
        [jnp.full((B, 1), -100, dtype=labels.dtype), labels], axis=1)

    # ---- correctness check against pure-JAX reference ----
    ref = reference(genre_ids, genre_mask, input_ids, genre_table, token_table)
    assert out.shape == (B, S + 1, H)
    assert extended_mask.shape == (B, S + 1)
    assert extended_labels.shape == (B, S + 1)
    assert jnp.allclose(out, ref, rtol=1e-5, atol=1e-5), "mismatch vs reference"

    print("KERNEL_OK")
</pallas_src>

<mosaic_0001>
module attributes {stable_mosaic.version = 11 : i64} {
  func.func @_conditioned_embeds_kernel(%arg0: i32, %arg1: memref<2x8xi32, #tpu.memory_space<smem>>, %arg2: memref<2x3xi32, #tpu.memory_space<vmem>>, %arg3: memref<2x3xi32, #tpu.memory_space<vmem>>, %arg4: memref<8x128xf32, #tpu.memory_space<vmem>>, %arg5: memref<256x128xf32, #tpu.memory_space<vmem>>, %arg6: memref<2x128xf32, #tpu.memory_space<vmem>>, %arg7: memref<2x8x128xf32, #tpu.memory_space<vmem>>) attributes {dimension_semantics = [#tpu.dimension_semantics<parallel>], iteration_bounds = array<i64: 1>, scalar_prefetch = 1 : i64, scratch_operands = 0 : i64, tpu.core_type = #tpu.core_type<tc>, window_params = [{pipeline_mode = #tpu.pipeline_mode<synchronous>, transform_indices = @transform_0, window_bounds = array<i64: 2, 3>}, {pipeline_mode = #tpu.pipeline_mode<synchronous>, transform_indices = @transform_1, window_bounds = array<i64: 2, 3>}, {pipeline_mode = #tpu.pipeline_mode<synchronous>, transform_indices = @transform_2, window_bounds = array<i64: 8, 128>}, {pipeline_mode = #tpu.pipeline_mode<synchronous>, transform_indices = @transform_3, window_bounds = array<i64: 256, 128>}, {pipeline_mode = #tpu.pipeline_mode<synchronous>, transform_indices = @transform_4, window_bounds = array<i64: 2, 128>}, {pipeline_mode = #tpu.pipeline_mode<synchronous>, transform_indices = @transform_5, window_bounds = array<i64: 2, 8, 128>}]} {
    %c0 = arith.constant 0 : index
    %c0_0 = arith.constant 0 : index
    %0 = vector.load %arg2[%c0, %c0_0] : memref<2x3xi32, #tpu.memory_space<vmem>>, vector<2x3xi32>
    %c0_1 = arith.constant 0 : index
    %c0_2 = arith.constant 0 : index
    %1 = vector.load %arg3[%c0_1, %c0_2] : memref<2x3xi32, #tpu.memory_space<vmem>>, vector<2x3xi32>
    %2 = arith.sitofp %1 : vector<2x3xi32> to vector<2x3xf32>
    %3 = tpu.iota {dimensions = array<i32: 1>} : vector<2x8xi32>
    %cst = arith.constant 0.000000e+00 : f32
    %4 = vector.broadcast %cst : f32 to vector<2x8xf32>
    %5 = vector.extract_strided_slice %0 {offsets = [0, 0], sizes = [2, 1], strides = [1, 1]} : vector<2x3xi32> to vector<2x1xi32>
    %6 = vector.broadcast %5 : vector<2x1xi32> to vector<2x8xi32>
    %7 = arith.cmpi eq, %3, %6 : vector<2x8xi32>
    %8 = vector.extract_strided_slice %2 {offsets = [0, 0], sizes = [2, 1], strides = [1, 1]} : vector<2x3xf32> to vector<2x1xf32>
    %cst_3 = arith.constant 0.000000e+00 : f32
    %9 = vector.shape_cast %8 : vector<2x1xf32> to vector<2x1xf32>
    %10 = vector.broadcast %9 : vector<2x1xf32> to vector<2x8xf32>
    %11 = vector.broadcast %cst_3 : f32 to vector<2x8xf32>
    %12 = arith.select %7, %10, %11 : vector<2x8xi1>, vector<2x8xf32>
    %13 = arith.addf %4, %12 : vector<2x8xf32>
    %14 = vector.extract_strided_slice %0 {offsets = [0, 1], sizes = [2, 1], strides = [1, 1]} : vector<2x3xi32> to vector<2x1xi32>
    %15 = vector.broadcast %14 : vector<2x1xi32> to vector<2x8xi32>
    %16 = arith.cmpi eq, %3, %15 : vector<2x8xi32>
    %17 = vector.extract_strided_slice %2 {offsets = [0, 1], sizes = [2, 1], strides = [1, 1]} : vector<2x3xf32> to vector<2x1xf32>
    %cst_4 = arith.constant 0.000000e+00 : f32
    %18 = vector.shape_cast %17 : vector<2x1xf32> to vector<2x1xf32>
    %19 = vector.broadcast %18 : vector<2x1xf32> to vector<2x8xf32>
    %20 = vector.broadcast %cst_4 : f32 to vector<2x8xf32>
    %21 = arith.select %16, %19, %20 : vector<2x8xi1>, vector<2x8xf32>
    %22 = arith.addf %13, %21 : vector<2x8xf32>
    %23 = vector.extract_strided_slice %0 {offsets = [0, 2], sizes = [2, 1], strides = [1, 1]} : vector<2x3xi32> to vector<2x1xi32>
    %24 = vector.broadcast %23 : vector<2x1xi32> to vector<2x8xi32>
    %25 = arith.cmpi eq, %3, %24 : vector<2x8xi32>
    %26 = vector.extract_strided_slice %2 {offsets = [0, 2], sizes = [2, 1], strides = [1, 1]} : vector<2x3xf32> to vector<2x1xf32>
    %cst_5 = arith.constant 0.000000e+00 : f32
    %27 = vector.shape_cast %26 : vector<2x1xf32> to vector<2x1xf32>
    %28 = vector.broadcast %27 : vector<2x1xf32> to vector<2x8xf32>
    %29 = vector.broadcast %cst_5 : f32 to vector<2x8xf32>
    %30 = arith.select %25, %28, %29 : vector<2x8xi1>, vector<2x8xf32>
    %31 = arith.addf %22, %30 : vector<2x8xf32>
    %cst_6 = arith.constant dense<0.000000e+00> : vector<2xf32>
    %32 = vector.multi_reduction <add>, %2, %cst_6 [1] : vector<2x3xf32> to vector<2xf32>
    %33 = vector.shape_cast %32 : vector<2xf32> to vector<2x1xf32>
    %cst_7 = arith.constant 3.000000e+00 : f32
    %34 = vector.broadcast %cst_7 : f32 to vector<2x1xf32>
    %35 = arith.divf %34, %33 : vector<2x1xf32>
    %36 = vector.broadcast %35 : vector<2x1xf32> to vector<2x8xf32>
    %37 = arith.mulf %31, %36 : vector<2x8xf32>
    %c0_8 = arith.constant 0 : index
    %c0_9 = arith.constant 0 : index
    %38 = vector.load %arg4[%c0_8, %c0_9] : memref<8x128xf32, #tpu.memory_space<vmem>>, vector<8x128xf32>
    %cst_10 = arith.constant dense<0.000000e+00> : vector<2x128xf32>
    %39 = tpu.matmul %37, %38, %cst_10 {dimension_numbers = #tpu.dot_dimension_numbers<[1], [0], [0], [1], [0, 0, 1, 1], [], []>} : vector<2x8xf32>, vector<8x128xf32>, vector<2x128xf32> -> vector<2x128xf32>
    %c0_11 = arith.constant 0 : index
    %c0_12 = arith.constant 0 : index
    %40 = vector.load %arg6[%c0_11, %c0_12] : memref<2x128xf32, #tpu.memory_space<vmem>>, vector<2x128xf32>
    tpu.vector_store %arg6[%c0_11, %c0_12], %39 {strides = array<i32>} : memref<2x128xf32, #tpu.memory_space<vmem>>, vector<2x128xf32>,
    %c0_13 = arith.constant 0 : index
    %c0_14 = arith.constant 0 : index
    %41 = memref.load %arg1[%c0_13, %c0_14] : memref<2x8xi32, #tpu.memory_space<smem>>
    %42 = arith.index_cast %41 : i32 to index
    %c0_15 = arith.constant 0 : index
    %43 = vector.load %arg5[%42, %c0_15] : memref<256x128xf32, #tpu.memory_space<vmem>>, vector<1x128xf32>
    %c0_16 = arith.constant 0 : index
    %c0_17 = arith.constant 0 : index
    %c0_18 = arith.constant 0 : index
    %44 = vector.load %arg7[%c0_16, %c0_17, %c0_18] : memref<2x8x128xf32, #tpu.memory_space<vmem>>, vector<1x1x128xf32>
    %45 = vector.shape_cast %44 : vector<1x1x128xf32> to vector<1x128xf32>
    %46 = vector.shape_cast %43 : vector<1x128xf32> to vector<1x1x128xf32>
    tpu.vector_store %arg7[%c0_16, %c0_17, %c0_18], %46 {strides = array<i32>} : memref<2x8x128xf32, #tpu.memory_space<vmem>>, vector<1x1x128xf32>,
    %c0_19 = arith.constant 0 : index
    %c1 = arith.constant 1 : index
    %47 = memref.load %arg1[%c0_19, %c1] : memref<2x8xi32, #tpu.memory_space<smem>>
    %48 = arith.index_cast %47 : i32 to index
    %c0_20 = arith.constant 0 : index
    %49 = vector.load %arg5[%48, %c0_20] : memref<256x128xf32, #tpu.memory_space<vmem>>, vector<1x128xf32>
    %c0_21 = arith.constant 0 : index
    %c1_22 = arith.constant 1 : index
    %c0_23 = arith.constant 0 : index
    %50 = vector.load %arg7[%c0_21, %c1_22, %c0_23] : memref<2x8x128xf32, #tpu.memory_space<vmem>>, vector<1x1x128xf32>
    %51 = vector.shape_cast %50 : vector<1x1x128xf32> to vector<1x128xf32>
    %52 = vector.shape_cast %49 : vector<1x128xf32> to vector<1x1x128xf32>
    tpu.vector_store %arg7[%c0_21, %c1_22, %c0_23], %52 {strides = array<i32>} : memref<2x8x128xf32, #tpu.memory_space<vmem>>, vector<1x1x128xf32>,
    %c0_24 = arith.constant 0 : index
    %c2 = arith.constant 2 : index
    %53 = memref.load %arg1[%c0_24, %c2] : memref<2x8xi32, #tpu.memory_space<smem>>
    %54 = arith.index_cast %53 : i32 to index
    %c0_25 = arith.constant 0 : index
    %55 = vector.load %arg5[%54, %c0_25] : memref<256x128xf32, #tpu.memory_space<vmem>>, vector<1x128xf32>
    %c0_26 = arith.constant 0 : index
    %c2_27 = arith.constant 2 : index
    %c0_28 = arith.constant 0 : index
    %56 = vector.load %arg7[%c0_26, %c2_27, %c0_28] : memref<2x8x128xf32, #tpu.memory_space<vmem>>, vector<1x1x128xf32>
    %57 = vector.shape_cast %56 : vector<1x1x128xf32> to vector<1x128xf32>
    %58 = vector.shape_cast %55 : vector<1x128xf32> to vector<1x1x128xf32>
    tpu.vector_store %arg7[%c0_26, %c2_27, %c0_28], %58 {strides = array<i32>} : memref<2x8x128xf32, #tpu.memory_space<vmem>>, vector<1x1x128xf32>,
    %c0_29 = arith.constant 0 : index
    %c3 = arith.constant 3 : index
    %59 = memref.load %arg1[%c0_29, %c3] : memref<2x8xi32, #tpu.memory_space<smem>>
    %60 = arith.index_cast %59 : i32 to index
    %c0_30 = arith.constant 0 : index
    %61 = vector.load %arg5[%60, %c0_30] : memref<256x128xf32, #tpu.memory_space<vmem>>, vector<1x128xf32>
    %c0_31 = arith.constant 0 : index
    %c3_32 = arith.constant 3 : index
    %c0_33 = arith.constant 0 : index
    %62 = vector.load %arg7[%c0_31, %c3_32, %c0_33] : memref<2x8x128xf32, #tpu.memory_space<vmem>>, vector<1x1x128xf32>
    %63 = vector.shape_cast %62 : vector<1x1x128xf32> to vector<1x128xf32>
    %64 = vector.shape_cast %61 : vector<1x128xf32> to vector<1x1x128xf32>
    tpu.vector_store %arg7[%c0_31, %c3_32, %c0_33], %64 {strides = array<i32>} : memref<2x8x128xf32, #tpu.memory_space<vmem>>, vector<1x1x128xf32>,
    %c0_34 = arith.constant 0 : index
    %c4 = arith.constant 4 : index
    %65 = memref.load %arg1[%c0_34, %c4] : memref<2x8xi32, #tpu.memory_space<smem>>
    %66 = arith.index_cast %65 : i32 to index
    %c0_35 = arith.constant 0 : index
    %67 = vector.load %arg5[%66, %c0_35] : memref<256x128xf32, #tpu.memory_space<vmem>>, vector<1x128xf32>
    %c0_36 = arith.constant 0 : index
    %c4_37 = arith.constant 4 : index
    %c0_38 = arith.constant 0 : index
    %68 = vector.load %arg7[%c0_36, %c4_37, %c0_38] : memref<2x8x128xf32, #tpu.memory_space<vmem>>, vector<1x1x128xf32>
    %69 = vector.shape_cast %68 : vector<1x1x128xf32> to vector<1x128xf32>
    %70 = vector.shape_cast %67 : vector<1x128xf32> to vector<1x1x128xf32>
    tpu.vector_store %arg7[%c0_36, %c4_37, %c0_38], %70 {strides = array<i32>} : memref<2x8x128xf32, #tpu.memory_space<vmem>>, vector<1x1x128xf32>,
    %c0_39 = arith.constant 0 : index
    %c5 = arith.constant 5 : index
    %71 = memref.load %arg1[%c0_39, %c5] : memref<2x8xi32, #tpu.memory_space<smem>>
    %72 = arith.index_cast %71 : i32 to index
    %c0_40 = arith.constant 0 : index
    %73 = vector.load %arg5[%72, %c0_40] : memref<256x128xf32, #tpu.memory_space<vmem>>, vector<1x128xf32>
    %c0_41 = arith.constant 0 : index
    %c5_42 = arith.constant 5 : index
    %c0_43 = arith.constant 0 : index
    %74 = vector.load %arg7[%c0_41, %c5_42, %c0_43] : memref<2x8x128xf32, #tpu.memory_space<vmem>>, vector<1x1x128xf32>
    %75 = vector.shape_cast %74 : vector<1x1x128xf32> to vector<1x128xf32>
    %76 = vector.shape_cast %73 : vector<1x128xf32> to vector<1x1x128xf32>
    tpu.vector_store %arg7[%c0_41, %c5_42, %c0_43], %76 {strides = array<i32>} : memref<2x8x128xf32, #tpu.memory_space<vmem>>, vector<1x1x128xf32>,
    %c0_44 = arith.constant 0 : index
    %c6 = arith.constant 6 : index
    %77 = memref.load %arg1[%c0_44, %c6] : memref<2x8xi32, #tpu.memory_space<smem>>
    %78 = arith.index_cast %77 : i32 to index
    %c0_45 = arith.constant 0 : index
    %79 = vector.load %arg5[%78, %c0_45] : memref<256x128xf32, #tpu.memory_space<vmem>>, vector<1x128xf32>
    %c0_46 = arith.constant 0 : index
    %c6_47 = arith.constant 6 : index
    %c0_48 = arith.constant 0 : index
    %80 = vector.load %arg7[%c0_46, %c6_47, %c0_48] : memref<2x8x128xf32, #tpu.memory_space<vmem>>, vector<1x1x128xf32>
    %81 = vector.shape_cast %80 : vector<1x1x128xf32> to vector<1x128xf32>
    %82 = vector.shape_cast %79 : vector<1x128xf32> to vector<1x1x128xf32>
    tpu.vector_store %arg7[%c0_46, %c6_47, %c0_48], %82 {strides = array<i32>} : memref<2x8x128xf32, #tpu.memory_space<vmem>>, vector<1x1x128xf32>,
    %c0_49 = arith.constant 0 : index
    %c7 = arith.constant 7 : index
    %83 = memref.load %arg1[%c0_49, %c7] : memref<2x8xi32, #tpu.memory_space<smem>>
    %84 = arith.index_cast %83 : i32 to index
    %c0_50 = arith.constant 0 : index
    %85 = vector.load %arg5[%84, %c0_50] : memref<256x128xf32, #tpu.memory_space<vmem>>, vector<1x128xf32>
    %c0_51 = arith.constant 0 : index
    %c7_52 = arith.constant 7 : index
    %c0_53 = arith.constant 0 : index
    %86 = vector.load %arg7[%c0_51, %c7_52, %c0_53] : memref<2x8x128xf32, #tpu.memory_space<vmem>>, vector<1x1x128xf32>
    %87 = vector.shape_cast %86 : vector<1x1x128xf32> to vector<1x128xf32>
    %88 = vector.shape_cast %85 : vector<1x128xf32> to vector<1x1x128xf32>
    tpu.vector_store %arg7[%c0_51, %c7_52, %c0_53], %88 {strides = array<i32>} : memref<2x8x128xf32, #tpu.memory_space<vmem>>, vector<1x1x128xf32>,
    %c1_54 = arith.constant 1 : index
    %c0_55 = arith.constant 0 : index
    %89 = memref.load %arg1[%c1_54, %c0_55] : memref<2x8xi32, #tpu.memory_space<smem>>
    %90 = arith.index_cast %89 : i32 to index
    %c0_56 = arith.constant 0 : index
    %91 = vector.load %arg5[%90, %c0_56] : memref<256x128xf32, #tpu.memory_space<vmem>>, vector<1x128xf32>
    %c1_57 = arith.constant 1 : index
    %c0_58 = arith.constant 0 : index
    %c0_59 = arith.constant 0 : index
    %92 = vector.load %arg7[%c1_57, %c0_58, %c0_59] : memref<2x8x128xf32, #tpu.memory_space<vmem>>, vector<1x1x128xf32>
    %93 = vector.shape_cast %92 : vector<1x1x128xf32> to vector<1x128xf32>
    %94 = vector.shape_cast %91 : vector<1x128xf32> to vector<1x1x128xf32>
    tpu.vector_store %arg7[%c1_57, %c0_58, %c0_59], %94 {strides = array<i32>} : memref<2x8x128xf32, #tpu.memory_space<vmem>>, vector<1x1x128xf32>,
    %c1_60 = arith.constant 1 : index
    %c1_61 = arith.constant 1 : index
    %95 = memref.load %arg1[%c1_60, %c1_61] : memref<2x8xi32, #tpu.memory_space<smem>>
    %96 = arith.index_cast %95 : i32 to index
    %c0_62 = arith.constant 0 : index
    %97 = vector.load %arg5[%96, %c0_62] : memref<256x128xf32, #tpu.memory_space<vmem>>, vector<1x128xf32>
    %c1_63 = arith.constant 1 : index
    %c1_64 = arith.constant 1 : index
    %c0_65 = arith.constant 0 : index
    %98 = vector.load %arg7[%c1_63, %c1_64, %c0_65] : memref<2x8x128xf32, #tpu.memory_space<vmem>>, vector<1x1x128xf32>
    %99 = vector.shape_cast %98 : vector<1x1x128xf32> to vector<1x128xf32>
    %100 = vector.shape_cast %97 : vector<1x128xf32> to vector<1x1x128xf32>
    tpu.vector_store %arg7[%c1_63, %c1_64, %c0_65], %100 {strides = array<i32>} : memref<2x8x128xf32, #tpu.memory_space<vmem>>, vector<1x1x128xf32>,
    %c1_66 = arith.constant 1 : index
    %c2_67 = arith.constant 2 : index
    %101 = memref.load %arg1[%c1_66, %c2_67] : memref<2x8xi32, #tpu.memory_space<smem>>
    %102 = arith.index_cast %101 : i32 to index
    %c0_68 = arith.constant 0 : index
    %103 = vector.load %arg5[%102, %c0_68] : memref<256x128xf32, #tpu.memory_space<vmem>>, vector<1x128xf32>
    %c1_69 = arith.constant 1 : index
    %c2_70 = arith.constant 2 : index
    %c0_71 = arith.constant 0 : index
    %104 = vector.load %arg7[%c1_69, %c2_70, %c0_71] : memref<2x8x128xf32, #tpu.memory_space<vmem>>, vector<1x1x128xf32>
    %105 = vector.shape_cast %104 : vector<1x1x128xf32> to vector<1x128xf32>
    %106 = vector.shape_cast %103 : vector<1x128xf32> to vector<1x1x128xf32>
    tpu.vector_store %arg7[%c1_69, %c2_70, %c0_71], %106 {strides = array<i32>} : memref<2x8x128xf32, #tpu.memory_space<vmem>>, vector<1x1x128xf32>,
    %c1_72 = arith.constant 1 : index
    %c3_73 = arith.constant 3 : index
    %107 = memref.load %arg1[%c1_72, %c3_73] : memref<2x8xi32, #tpu.memory_space<smem>>
    %108 = arith.index_cast %107 : i32 to index
    %c0_74 = arith.constant 0 : index
    %109 = vector.load %arg5[%108, %c0_74] : memref<256x128xf32, #tpu.memory_space<vmem>>, vector<1x128xf32>
    %c1_75 = arith.constant 1 : index
    %c3_76 = arith.constant 3 : index
    %c0_77 = arith.constant 0 : index
    %110 = vector.load %arg7[%c1_75, %c3_76, %c0_77] : memref<2x8x128xf32, #tpu.memory_space<vmem>>, vector<1x1x128xf32>
    %111 = vector.shape_cast %110 : vector<1x1x128xf32> to vector<1x128xf32>
    %112 = vector.shape_cast %109 : vector<1x128xf32> to vector<1x1x128xf32>
    tpu.vector_store %arg7[%c1_75, %c3_76, %c0_77], %112 {strides = array<i32>} : memref<2x8x128xf32, #tpu.memory_space<vmem>>, vector<1x1x128xf32>,
    %c1_78 = arith.constant 1 : index
    %c4_79 = arith.constant 4 : index
    %113 = memref.load %arg1[%c1_78, %c4_79] : memref<2x8xi32, #tpu.memory_space<smem>>
    %114 = arith.index_cast %113 : i32 to index
    %c0_80 = arith.constant 0 : index
    %115 = vector.load %arg5[%114, %c0_80] : memref<256x128xf32, #tpu.memory_space<vmem>>, vector<1x128xf32>
    %c1_81 = arith.constant 1 : index
    %c4_82 = arith.constant 4 : index
    %c0_83 = arith.constant 0 : index
    %116 = vector.load %arg7[%c1_81, %c4_82, %c0_83] : memref<2x8x128xf32, #tpu.memory_space<vmem>>, vector<1x1x128xf32>
    %117 = vector.shape_cast %116 : vector<1x1x128xf32> to vector<1x128xf32>
    %118 = vector.shape_cast %115 : vector<1x128xf32> to vector<1x1x128xf32>
    tpu.vector_store %arg7[%c1_81, %c4_82, %c0_83], %118 {strides = array<i32>} : memref<2x8x128xf32, #tpu.memory_space<vmem>>, vector<1x1x128xf32>,
    %c1_84 = arith.constant 1 : index
    %c5_85 = arith.constant 5 : index
    %119 = memref.load %arg1[%c1_84, %c5_85] : memref<2x8xi32, #tpu.memory_space<smem>>
    %120 = arith.index_cast %119 : i32 to index
    %c0_86 = arith.constant 0 : index
    %121 = vector.load %arg5[%120, %c0_86] : memref<256x128xf32, #tpu.memory_space<vmem>>, vector<1x128xf32>
    %c1_87 = arith.constant 1 : index
    %c5_88 = arith.constant 5 : index
    %c0_89 = arith.constant 0 : index
    %122 = vector.load %arg7[%c1_87, %c5_88, %c0_89] : memref<2x8x128xf32, #tpu.memory_space<vmem>>, vector<1x1x128xf32>
    %123 = vector.shape_cast %122 : vector<1x1x128xf32> to vector<1x128xf32>
    %124 = vector.shape_cast %121 : vector<1x128xf32> to vector<1x1x128xf32>
    tpu.vector_store %arg7[%c1_87, %c5_88, %c0_89], %124 {strides = array<i32>} : memref<2x8x128xf32, #tpu.memory_space<vmem>>, vector<1x1x128xf32>,
    %c1_90 = arith.constant 1 : index
    %c6_91 = arith.constant 6 : index
    %125 = memref.load %arg1[%c1_90, %c6_91] : memref<2x8xi32, #tpu.memory_space<smem>>
    %126 = arith.index_cast %125 : i32 to index
    %c0_92 = arith.constant 0 : index
    %127 = vector.load %arg5[%126, %c0_92] : memref<256x128xf32, #tpu.memory_space<vmem>>, vector<1x128xf32>
    %c1_93 = arith.constant 1 : index
    %c6_94 = arith.constant 6 : index
    %c0_95 = arith.constant 0 : index
    %128 = vector.load %arg7[%c1_93, %c6_94, %c0_95] : memref<2x8x128xf32, #tpu.memory_space<vmem>>, vector<1x1x128xf32>
    %129 = vector.shape_cast %128 : vector<1x1x128xf32> to vector<1x128xf32>
    %130 = vector.shape_cast %127 : vector<1x128xf32> to vector<1x1x128xf32>
    tpu.vector_store %arg7[%c1_93, %c6_94, %c0_95], %130 {strides = array<i32>} : memref<2x8x128xf32, #tpu.memory_space<vmem>>, vector<1x1x128xf32>,
    %c1_96 = arith.constant 1 : index
    %c7_97 = arith.constant 7 : index
    %131 = memref.load %arg1[%c1_96, %c7_97] : memref<2x8xi32, #tpu.memory_space<smem>>
    %132 = arith.index_cast %131 : i32 to index
    %c0_98 = arith.constant 0 : index
    %133 = vector.load %arg5[%132, %c0_98] : memref<256x128xf32, #tpu.memory_space<vmem>>, vector<1x128xf32>
    %c1_99 = arith.constant 1 : index
    %c7_100 = arith.constant 7 : index
    %c0_101 = arith.constant 0 : index
    %134 = vector.load %arg7[%c1_99, %c7_100, %c0_101] : memref<2x8x128xf32, #tpu.memory_space<vmem>>, vector<1x1x128xf32>
    %135 = vector.shape_cast %134 : vector<1x1x128xf32> to vector<1x128xf32>
    %136 = vector.shape_cast %133 : vector<1x128xf32> to vector<1x1x128xf32>
    tpu.vector_store %arg7[%c1_99, %c7_100, %c0_101], %136 {strides = array<i32>} : memref<2x8x128xf32, #tpu.memory_space<vmem>>, vector<1x1x128xf32>,
    return
  }
  func.func @transform_0(%arg0: i32, %arg1: memref<2x8xi32, #tpu.memory_space<smem>>) -> (i32, i32) {
    %c0_i32 = arith.constant 0 : i32
    %c0_i32_0 = arith.constant 0 : i32
    %c0_i32_1 = arith.constant 0 : i32
    return %c0_i32, %c0_i32_0 : i32, i32
  }
  func.func @transform_1(%arg0: i32, %arg1: memref<2x8xi32, #tpu.memory_space<smem>>) -> (i32, i32) {
    %c0_i32 = arith.constant 0 : i32
    %c0_i32_0 = arith.constant 0 : i32
    %c0_i32_1 = arith.constant 0 : i32
    return %c0_i32, %c0_i32_0 : i32, i32
  }
  func.func @transform_2(%arg0: i32, %arg1: memref<2x8xi32, #tpu.memory_space<smem>>) -> (i32, i32) {
    %c0_i32 = arith.constant 0 : i32
    %c0_i32_0 = arith.constant 0 : i32
    %c0_i32_1 = arith.constant 0 : i32
    return %c0_i32, %c0_i32_0 : i32, i32
  }
  func.func @transform_3(%arg0: i32, %arg1: memref<2x8xi32, #tpu.memory_space<smem>>) -> (i32, i32) {
    %c0_i32 = arith.constant 0 : i32
    %c0_i32_0 = arith.constant 0 : i32
    %c0_i32_1 = arith.constant 0 : i32
    return %c0_i32, %c0_i32_0 : i32, i32
  }
  func.func @transform_4(%arg0: i32, %arg1: memref<2x8xi32, #tpu.memory_space<smem>>) -> (i32, i32) {
    %c0_i32 = arith.constant 0 : i32
    %c0_i32_0 = arith.constant 0 : i32
    %c0_i32_1 = arith.constant 0 : i32
    return %c0_i32, %c0_i32_0 : i32, i32
  }
  func.func @transform_5(%arg0: i32, %arg1: memref<2x8xi32, #tpu.memory_space<smem>>) -> (i32, i32, i32) {
    %c0_i32 = arith.constant 0 : i32
    %c0_i32_0 = arith.constant 0 : i32
    %c0_i32_1 = arith.constant 0 : i32
    %c0_i32_2 = arith.constant 0 : i32
    return %c0_i32, %c0_i32_0, %c0_i32_1 : i32, i32, i32
  }
}

</mosaic_0001>

<bundles_post_ra>
// kernel: tpu_custom_call.1
= control target key start
LH: loop header
LB: loop body
LE: loop exit
PB: predicated region body
PF: predicated region fallthrough
CT: control target
= control target key end

     0   :  { %s573_s0 = inlined_call_operand.hbm [shape: s32[2,8], index: 0, kind: input, shape index: {}]   ;;  %s574_s1 = inlined_call_operand.vmem [shape: s32[2,3], index: 1, kind: input, shape index: {}]   ;;  %s575_s2 = inlined_call_operand.hbm [shape: s32[2,3], index: 2, kind: input, shape index: {}]   ;;  %s576_s3 = inlined_call_operand.vmem [shape: f32[8,128], index: 3, kind: input, shape index: {}]   ;;  %s577_s4 = inlined_call_operand.hbm [shape: f32[256,128], index: 4, kind: input, shape index: {}]   ;;  %s578_s5 = inlined_call_operand.hbm [shape: f32[2,128], index: 5, kind: output, shape index: {0}]   ;;  %s579_s6 = inlined_call_operand.hbm [shape: f32[2,8,128], index: 6, kind: output, shape index: {1}]  }
   0x1   :  { %s327_s23 = scalar_lea.hbm %s573_s0, 32 }
   0x2   :  { %p328_p0 = scmp.ne.s32.totalorder %s573_s0, %s327_s23  ;;  %p331_p1 = scmp.lt.u32.totalorder %s327_s23, %s573_s0 }
   0x4   :  { %p333_p2 = pnand %p331_p1, %p328_p0 }
   0x6   :  { %336 = shalt.err (!%p333_p2)  }
   0x7   :  { %s435_s28 = smov [#allocation3]  }
   0x8   :  { %13 = dma.hbm_to_smem %s573_s0, 32, %s435_s28, [#allocation2] }
   0x9   :  { %425 = dma.done.wait [#allocation2], 32 }
   0xa   :  { %426 = vsyncadd [#allocation2], 4294967264 }
   0xb   :  { %15 = sfence }
   0xc   :  { %16 = vsyncpa [#allocation5], 0 }
   0xd   :  { %17 = vsyncpa [#allocation8], 0 }
   0xe   :  { %18 = vsyncpa [#allocation6], 0 }
   0xf   :  { %19 = vsyncpa [#allocation11], 0  ;;  %s436_s7 = smov [#allocation4]   ;;  %s437_s9 = smov [#allocation7]  }
  0x10   :  { %s28_s8 = sshll.u32 %s436_s7, 4  ;;  %s39_s10 = sshll.u32 %s437_s9, 4  ;;  %s29_s8 = int_to_ptr.vmem [resolvable:$true] %s28_s8  ;;  %s494_s10 = int_to_ptr.vmem [resolvable:$true] %s39_s10 }
  0x11   :  { %s337_s13 = scalar_lea.hbm %s575_s2, 32 }
  0x12   :  { %p338_p3 = scmp.ne.s32.totalorder %s575_s2, %s337_s13  ;;  %p341_p4 = scmp.lt.u32.totalorder %s337_s13, %s575_s2 }
  0x14   :  { %p343_p5 = pnand %p341_p4, %p338_p3 }
  0x16   :  { %346 = shalt.err (!%p343_p5)
}
  0x17   :  { %s347_s17 = scalar_lea.vmem %s29_s8, 32  ;;  %p352_p7 = scmp.lt.s32.totalorder %s29_s8, %s29_s8 }
  0x18   :  { %p348_p6 = scmp.ne.s32.totalorder %s29_s8, %s347_s17  ;;  %p353_p8 = scmp.lt.s32.totalorder %s347_s17, %s347_s17 }
  0x1a   :  { %p354_p9 = por %p353_p8, %p352_p7 }
  0x1c   :  { %p355_p10 = pnand %p354_p9, %p348_p6 }
  0x1e   :  { %358 = shalt.err (!%p355_p10)
}
  0x1f   :  { %31 = dma.hbm_to_vmem [thread:$0]  %s575_s2, 32, %s29_s8, [#allocation5]  }
  0x20   :  { %s359_s22 = scalar_lea.hbm %s577_s4, 4096 }
  0x21   :  { %p360_p11 = scmp.ne.s32.totalorder %s577_s4, %s359_s22  ;;  %p363_p12 = scmp.lt.u32.totalorder %s359_s22, %s577_s4 }
  0x23   :  { %p365_p13 = pnand %p363_p12, %p360_p11 }
  0x25   :  { %368 = shalt.err (!%p365_p13)
}
  0x26   :  { %s369_s27 = scalar_lea.vmem %s494_s10, 4096  ;;  %p374_p1 = scmp.lt.s32.totalorder %s494_s10, %s494_s10 }
  0x27   :  { %p370_p0 = scmp.ne.s32.totalorder %s494_s10, %s369_s27  ;;  %p375_p2 = scmp.lt.s32.totalorder %s369_s27, %s369_s27 }
  0x29   :  { %p376_p3 = por %p375_p2, %p374_p1 }
  0x2b   :  { %p377_p4 = pnand %p376_p3, %p370_p0 }
  0x2d   :  { %380 = shalt.err (!%p377_p4)
}
  0x2e   :  { %s438_s2 = smov 128   ;;  %s439_s28 = smov 8  }
  0x2f   :  { %45 = dma.hbm_to_vmem [thread:$0]  %s577_s4, 4096, %s494_s10, [#allocation8], %s438_s2, %s438_s2, %s439_s28  }
  0x30   :  { %427 = dma.done.wait [#allocation5], 32  }
  0x31   :  { %428 = vsyncadd [#allocation5], 4294967264 }
  0x32   :  { %429 = dma.done.wait [#allocation8], 4096  }
  0x33   :  { %430 = vsyncadd [#allocation8], 4294963200  ;;  %v440_v0 = vmov 1   ;;  %v441_v1 = vmov 0   ;;  %v52_v2 = vld [vmem:[%s574_s1] sm:$0x3]  ;;  %v55_v11 = vlaneseq }
  0x34   :  { %320 = vset.pattern.permute.xlu1 %v440_v0  ;;  %319 = vset.pattern.permute.xlu0 %v441_v1  ;;  %v53_v3 = vld [vmem:[#allocation4] sm:$0x3]  ;;  %vm88_vm0 = vcmask 17408   ;;  %v442_v6 = vmov 2   ;;  %v443_v7 = vmov 0.0   ;;  %v95_v8 = vld [vmem:[%s576_s3] sm:$0xff] }
  0x35   :  { %69 = vperm.xlu1 %320, %v52_v2   ;;  %v54_v4 = vcvt.s32.f32 %v53_v3  ;;  %302 = vmatprep.subr.mxu0 %v443_v7  ;;  %vm444_vm1 = vmmov 0   ;;  %v56_v14 = vand.u32 127, %v55_v11  ;;  %vm96_vm5 = vcmask 64512   ;;  %s171_s3 = sld [smem:[#allocation3]]  ;;  %s285_s9 = sld [smem:[#allocation3 + $0x1]] }
  0x36   :  { %303 = vmatpush3.msra.mxu0 %v95_v8  ;;  %304 = vmatprep.mubr.msk.f32.mxu0 %vm444_vm1, %v443_v7  ;;  %s286_s10 = sld [smem:[#allocation3 + $0x2]]  ;;  %s287_s11 = sld [smem:[#allocation3 + $0x3]] }
  0x37   :  { %v89_v5 = vsel %vm88_vm0, %v54_v4, 0.0  ;;  %s288_s12 = sld [smem:[#allocation3 + $0x4]]  ;;  %s289_s13 = sld [smem:[#allocation3 + $0x5]] }
  0x38   :  { %90 = vadd.xlane.f32.xlu0 %v89_v5  ;;  %s290_s14 = sld [smem:[#allocation3 + $0x6]]  ;;  %s291_s0 = sld [smem:[#allocation3 + $0x7]] }
  0x39   :  { %321 = vset.pattern.permute.xlu1 %v441_v1  ;;  %s534_s15 = sld [smem:[#allocation3 + $0x80]]  ;;  %s536_s16 = sld [smem:[#allocation3 + $0x81]] }
  0x3a   :  { %63 = vperm.xlu1 %321, %v54_v4   ;;  %s538_s17 = sld [smem:[#allocation3 + $0x82]]  ;;  %s540_s18 = sld [smem:[#allocation3 + $0x83]] }
  0x3b   :  { %s172_s19 = scalar_lea.vmem [#allocation7], %s171_s3  ;;  %s176_s20 = scalar_lea.vmem [#allocation7], %s285_s9 }
  0x3c   :  { %v173_v26 = vld [vmem:[%s172_s19] sm:$0x1]  ;;  %s180_s21 = scalar_lea.vmem [#allocation7], %s286_s10  ;;  %s184_s22 = scalar_lea.vmem [#allocation7], %s287_s11 }
  0x3d   :  { %v177_v27 = vld [vmem:[%s176_s20] sm:$0x1]  ;;  %174 = vst [vmem:[#allocation10] sm:$0x1] %v173_v26  ;;  %s188_s23 = scalar_lea.vmem [#allocation7], %s288_s12  ;;  %s192_s24 = scalar_lea.vmem [#allocation7], %s289_s13 }
  0x3e   :  { %322 = vset.pattern.permute.xlu1 %v440_v0  ;;  %178 = vst [vmem:[#allocation10 + $0x1] sm:$0x1] %v177_v27  ;;  %v181_v28 = vld [vmem:[%s180_s21] sm:$0x1]  ;;  %s196_s25 = scalar_lea.vmem [#allocation7], %s290_s14  ;;  %s200_s26 = scalar_lea.vmem [#allocation7], %s291_s0 }
  0x3f   :  { %73 = vperm.xlu1 %322, %v54_v4   ;;  %v185_v29 = vld [vmem:[%s184_s22] sm:$0x1]  ;;  %182 = vst [vmem:[#allocation10 + $0x2] sm:$0x1] %v181_v28  ;;  %s204_s27 = scalar_lea.vmem [#allocation7], %s534_s15  ;;  %s209_s29 = scalar_lea.vmem [#allocation7], %s536_s16 }
  0x40   :  { %186 = vst [vmem:[#allocation10 + $0x3] sm:$0x1] %v185_v29  ;;  %v189_v30 = vld [vmem:[%s188_s23] sm:$0x1]  ;;  %s213_s30 = scalar_lea.vmem [#allocation7], %s538_s17  ;;  %s217_s7 = scalar_lea.vmem [#allocation7], %s540_s18 }
  0x41   :  { %v193_v31 = vld [vmem:[%s192_s24] sm:$0x1]  ;;  %190 = vst [vmem:[#allocation10 + $0x4] sm:$0x1] %v189_v30  ;;  %s296_s8 = sld [smem:[#allocation3 + $0x84]]  ;;  %s297_s4 = sld [smem:[#allocation3 + $0x85]] }
  0x42   :  { %194 = vst [vmem:[#allocation10 + $0x5] sm:$0x1] %v193_v31  ;;  %v197_v32 = vld [vmem:[%s196_s25] sm:$0x1]  ;;  %s298_s1 = sld [smem:[#allocation3 + $0x86]]  ;;  %s299_s3 = sld [smem:[#allocation3 + $0x87]] }
  0x43   :  { %323 = vset.pattern.permute.xlu1 %v442_v6  ;;  %v201_v33 = vld [vmem:[%s200_s26] sm:$0x1]  ;;  %198 = vst [vmem:[#allocation10 + $0x6] sm:$0x1] %v197_v32  ;;  %s445_s9 = smov [#allocation10]  }
  0x44   :  { %79 = vperm.xlu1 %323, %v52_v2   ;;  %202 = vst [vmem:[#allocation10 + $0x7] sm:$0x1] %v201_v33  ;;  %v205_v34 = vld [vmem:[%s204_s27] sm:$0x1]  ;;  %s251_s10 = sshll.u32 %s445_s9, 4  ;;  %s252_s10 = int_to_ptr.vmem [resolvable:$true] %s251_s10 }
  0x45   :  { %v210_v35 = vld [vmem:[%s209_s29] sm:$0x1]  ;;  %207 = vst [vmem:[#allocation10 + $0x8] sm:$0x1] %v205_v34  ;;  %s381_s0 = scalar_lea.vmem %s252_s10, 256  ;;  %p386_p6 = scmp.lt.s32.totalorder %s252_s10, %s252_s10 }
  0x46   :  { %211 = vst [vmem:[#allocation10 + $0x9] sm:$0x1] %v210_v35  ;;  %v214_v36 = vld [vmem:[%s213_s30] sm:$0x1]  ;;  %p382_p5 = scmp.ne.s32.totalorder %s252_s10, %s381_s0  ;;  %p387_p7 = scmp.lt.s32.totalorder %s381_s0, %s381_s0 }
  0x47   :  { %v218_v37 = vld [vmem:[%s217_s7] sm:$0x1]  ;;  %215 = vst [vmem:[#allocation10 + $0xa] sm:$0x1] %v214_v36  ;;  %s221_s11 = scalar_lea.vmem [#allocation7], %s296_s8  ;;  %s225_s12 = scalar_lea.vmem [#allocation7], %s297_s4 }
  0x48   :  { %83 = vperm.xlu1 %323, %v54_v4   ;;  %219 = vst [vmem:[#allocation10 + $0xb] sm:$0x1] %v218_v37  ;;  %v222_v38 = vld [vmem:[%s221_s11] sm:$0x1]  ;;  %s229_s13 = scalar_lea.vmem [#allocation7], %s298_s1  ;;  %s233_s14 = scalar_lea.vmem [#allocation7], %s299_s3 }
  0x49   :  { %223 = vst [vmem:[#allocation10 + $0xc] sm:$0x1] %v222_v38  ;;  %v226_v39 = vld [vmem:[%s225_s12] sm:$0x1]  ;;  %p388_p8 = por %p387_p7, %p386_p6 }
  0x4a   :  { %v230_v40 = vld [vmem:[%s229_s13] sm:$0x1]  ;;  %227 = vst [vmem:[#allocation10 + $0xd] sm:$0x1] %v226_v39 }
  0x4b   :  { %231 = vst [vmem:[#allocation10 + $0xe] sm:$0x1] %v230_v40  ;;  %v234_v41 = vld [vmem:[%s233_s14] sm:$0x1]  ;;  %p389_p9 = pnand %p388_p8, %p382_p5 }
  0x4c   :  { %235 = vst [vmem:[#allocation10 + $0xf] sm:$0x1] %v234_v41 }
  0x4e   :  { %58 = vperm.xlu0 %319, %v52_v2  }
  0x52   :  { %324 = vset.pattern.permute.xlu0 %v442_v6 }
  0xb4   :  { %v70_v9 = vpop.permute.xlu1 %69 }
  0xb5   :  { %vm71_vm2 = vcmp.eq.s32.totalorder %v56_v14, %v70_v9 }
  0xb9   :  { %v64_v10 = vpop.permute.xlu1 %63 }
  0xbe   :  { %v74_v12 = vpop.permute.xlu1 %73 }
  0xbf   :  { %v76_v18 = vsel %vm71_vm2, %v74_v12, 0.0 }
  0xc3   :  { %v80_v15 = vpop.permute.xlu1 %79 }
  0xc4   :  { %vm81_vm3 = vcmp.eq.s32.totalorder %v56_v14, %v80_v15 }
  0xc5   :  { %v91_v13 = vpop.xlane.xlu0 %90 }
  0xc6   :  { %325 = vrcp.f32 %v91_v13 }
  0xc7   :  { %v84_v17 = vpop.permute.xlu1 %83 }
  0xc8   :  { %v86_v23 = vsel %vm81_vm3, %v84_v17, 0.0 }
  0xcd   :  { %v59_v16 = vpop.permute.xlu0 %58 }
  0xce   :  { %vm60_vm4 = vcmp.eq.s32.totalorder %v56_v14, %v59_v16 }
  0xcf   :  { %v66_v19 = vsel %vm60_vm4, %v64_v10, 0.0 }
  0xd0   :  { %v326_v20 = vpop.eup %325  ;;  %v77_v21 = vadd.f32 %v76_v18, %v66_v19 }
  0xd1   :  { %v93_v22 = vmul.f32 3.0, %v326_v20 }
  0xd2   :  { %v87_v24 = vadd.f32 %v86_v23, %v77_v21 }
  0xd4   :  { %v94_v25 = vmul.f32 %v93_v22, %v87_v24 }
  0xd6   :  { %305 = vmatmul.mubr.msk.f32.vlgmr.msra.gmra.mrb[0].mxu0 %vm96_vm5, %v94_v25 }
  0xd7   :  { %392 = shalt.err (!%p389_p9)
}
  0xd8   :  { %s393_s17 = scalar_lea.hbm %s579_s6, 256 }
  0xd9   :  { %p394_p10 = scmp.ne.s32.totalorder %s579_s6, %s393_s17  ;;  %p397_p11 = scmp.lt.u32.totalorder %s393_s17, %s579_s6 }
  0xdb   :  { %p399_p12 = pnand %p397_p11, %p394_p10 }
  0xdd   :  { %402 = shalt.err (!%p399_p12)
}
  0xde   :  { %257 = dma.vmem_to_hbm [thread:$0]  %s252_s10, 256, %s579_s6, [#allocation11], %s438_s2, %s438_s2, %s439_s28  }
  0xdf   :  { %s446_s24 = smov [#allocation9]  }
  0xe0   :  { %s242_s25 = sshll.u32 %s446_s24, 4  ;;  %s243_s25 = int_to_ptr.vmem [resolvable:$true] %s242_s25 }
  0xe1   :  { %s403_s26 = scalar_lea.vmem %s243_s25, 32  ;;  %p408_p0 = scmp.lt.s32.totalorder %s243_s25, %s243_s25 }
  0xe2   :  { %p404_p13 = scmp.ne.s32.totalorder %s243_s25, %s403_s26  ;;  %p409_p1 = scmp.lt.s32.totalorder %s403_s26, %s403_s26 }
  0xe4   :  { %p410_p2 = por %p409_p1, %p408_p0 }
  0xe6   :  { %p411_p3 = pnand %p410_p2, %p404_p13 }
 0x1a9   :  { %v166_v42 = vpop.f32.mrb[0].mxu0 }
 0x1aa   :  { %170 = vst [vmem:[#allocation9] sm:$0x3] %v166_v42  ;;  %v306_v43 = vpop.f32.mrb[1].mxu0 }
 0x1ab   :  { %414 = shalt.err (!%p411_p3)
}
 0x1ac   :  { %s415_s30 = scalar_lea.hbm %s578_s5, 32 }
 0x1ad   :  { %p416_p4 = scmp.ne.s32.totalorder %s578_s5, %s415_s30  ;;  %p419_p5 = scmp.lt.u32.totalorder %s415_s30, %s578_s5 }
 0x1af   :  { %p421_p6 = pnand %p419_p5, %p416_p4 }
 0x1b1   :  { %424 = shalt.err (!%p421_p6)
}
 0x1b2   :  { %245 = dma.vmem_to_hbm [thread:$0]  %s243_s25, 32, %s578_s5, [#allocation6]  }
 0x1b3   :  { %431 = dma.done.wait [#allocation6], 32  }
 0x1b4   :  { %432 = vsyncadd [#allocation6], 4294967264 }
 0x1b5   :  { %433 = dma.done.wait [#allocation11], 256  }
 0x1b6   :  { %434 = vsyncadd [#allocation11], 4294967040 }
 0x1b7   :  { %264 = vsyncpa [#allocation5], 1 }
 0x1b8   :  { %265 = vsyncpa [#allocation8], 1 }
 0x1b9   :  { %266 = vsyncpa [#allocation6], 1 }
 0x1ba   :  { %267 = vsyncpa [#allocation11], 1 }

</bundles_post_ra>
